<compile_context>
chip_gen: v7x
topology: tpu7x:2x2x1
jax: 0.10.0
libtpu: 0.0.40
codegen_flags: <defaults>
</compile_context>

<pallas_src>
import functools

import jax
import jax.numpy as jnp
from jax.experimental import pallas as pl
from jax.experimental.pallas import tpu as pltpu

LANE = 128


def _round_up(x, m):
    return (x + m - 1) // m * m


def _sage_layer_kernel(adj_ref, inv_deg_ref, h_ref, w_ref, b_ref, out_ref, *, relu):
    """One SAGEConv('gcn') layer for one tile of destination rows.

    adj_ref     : (TM, N_pad)      bf16, rows of (A + I) for this dst tile (streamed)
    inv_deg_ref : (TM, 1)          f32,  1 / (in_deg + 1)
    h_ref       : (N_pad, Fin_pad) bf16, full source features (VMEM resident)
    w_ref       : (Fin_pad, Fout_pad) bf16, fc_neigh weight (stored transposed)
    b_ref       : (1, Fout_pad)    f32,  fc_neigh bias
    out_ref     : (TM, Fout_pad)
    """
    neigh = jnp.dot(adj_ref[...], h_ref[...],
                    preferred_element_type=jnp.float32)          # MXU, f32 acc
    agg = neigh * inv_deg_ref[...]                               # 'gcn' mean incl. self
    out = jnp.dot(agg.astype(jnp.bfloat16), w_ref[...],
                  preferred_element_type=jnp.float32) + b_ref[...]
    if relu:
        out = jnp.maximum(out, 0.0)
    out_ref[...] = out.astype(out_ref.dtype)


def _vmem_limit_bytes(tm, n_pad, fin, fout):
    # Conservative (double-buffer everything) estimate, clamped to [16 MiB, 64 MiB]
    # so the request is valid on every generation (v7x: 64 MiB physical per TC).
    est = 2 * (tm * n_pad * 2        # adj tile (bf16)
               + tm * LANE * 4       # inv_deg tile (f32, lane-padded)
               + n_pad * fin * 2     # full H (bf16)
               + fin * fout * 2      # W (bf16)
               + 8 * fout * 4        # bias (f32, sublane-padded)
               + tm * fout * 4)      # out tile (f32 worst case)
    return int(min(64 << 20, max(4 * est, 16 << 20)))


def _sage_layer(adj_self, inv_deg, h, w, b, *, relu, out_dtype):
    n_pad = adj_self.shape[0]
    fin = h.shape[1]
    fout = w.shape[1]
    # >=256 row tiles fill the v6e/v7x 256x256 MXU; 128 suffices on v5e and small N.
    tm = 256 if n_pad % 256 == 0 else 128
    grid = (n_pad // tm,)

    return pl.pallas_call(
        functools.partial(_sage_layer_kernel, relu=relu),
        out_shape=jax.ShapeDtypeStruct((n_pad, fout), out_dtype),
        grid=grid,
        in_specs=[
            pl.BlockSpec((tm, n_pad), lambda i: (i, 0)),    # adj row tile (streamed)
            pl.BlockSpec((tm, 1), lambda i: (i, 0)),        # inv_deg row tile
            pl.BlockSpec((n_pad, fin), lambda i: (0, 0)),   # full H (resident)
            pl.BlockSpec((fin, fout), lambda i: (0, 0)),    # W (resident)
            pl.BlockSpec((1, fout), lambda i: (0, 0)),      # bias (resident)
        ],
        out_specs=pl.BlockSpec((tm, fout), lambda i: (i, 0)),
        compiler_params=pltpu.CompilerParams(
            dimension_semantics=("parallel",),              # dst-row tiles independent
            vmem_limit_bytes=_vmem_limit_bytes(tm, n_pad, fin, fout),
        ),
    )(adj_self, inv_deg, h, w, b)


def sage_forward(adj_self_p, inv_deg_p, x_p, params_p):
    # dropout(p=0.5) on the input: eval mode -> identity.
    h1 = _sage_layer(adj_self_p, inv_deg_p, x_p, params_p["w0"], params_p["b0"],
                     relu=True, out_dtype=jnp.bfloat16)
    # dropout(p=0.5) between layers: eval mode -> identity.
    # TODO(synk): training-mode stochastic dropout not implemented.
    out = _sage_layer(adj_self_p, inv_deg_p, h1, params_p["w1"], params_p["b1"],
                      relu=False, out_dtype=jnp.float32)
    return out


# ---- one-time (per-graph / per-param) preparation, hoisted out of the forward ----

def prepare_graph(adj):
    """adj: (N, N) f32 dense adjacency, adj[dst, src] = 1. Done once per graph."""
    n = adj.shape[0]
    n_pad = _round_up(n, LANE)
    deg = jnp.sum(adj, axis=-1, keepdims=True)                 # in-degree (exact: 0/1 sums)
    inv_deg = 1.0 / (deg + 1.0)
    inv_deg_p = jnp.pad(inv_deg, ((0, n_pad - n), (0, 0)), constant_values=1.0)
    adj_self = adj + jnp.eye(n, dtype=adj.dtype)               # fold self term; exact in bf16
    adj_self_p = jnp.pad(adj_self,
                         ((0, n_pad - n), (0, n_pad - n))).astype(jnp.bfloat16)
    return adj_self_p, inv_deg_p, n_pad


def prepare_features(x, n_pad):
    n, fin = x.shape
    fin_pad = _round_up(fin, LANE)
    return jnp.pad(x, ((0, n_pad - n), (0, fin_pad - fin))).astype(jnp.bfloat16)


def prepare_params(params):
    """Pad/cast fc_neigh weights (stored as (Fin, Fout)) and biases once."""
    def pad_w(w):
        fi, fo = w.shape
        return jnp.pad(w, ((0, _round_up(fi, LANE) - fi),
                           (0, _round_up(fo, LANE) - fo))).astype(jnp.bfloat16)

    def pad_b(b):
        fo = b.shape[1]
        return jnp.pad(b, ((0, 0), (0, _round_up(fo, LANE) - fo))).astype(jnp.float32)

    return {"w0": pad_w(params["w0"]), "b0": pad_b(params["b0"]),
            "w1": pad_w(params["w1"]), "b1": pad_b(params["b1"])}


def init_params(key, in_size, hid_size, out_size):
    k0, k1, k2, k3 = jax.random.split(key, 4)
    # fc_neigh weights stored transposed as (Fin, Fout) for the kernel.
    w0 = jax.random.normal(k0, (in_size, hid_size), jnp.float32) * 0.1
    b0 = jax.random.normal(k1, (1, hid_size), jnp.float32) * 0.1
    w1 = jax.random.normal(k2, (hid_size, out_size), jnp.float32) * 0.1
    b1 = jax.random.normal(k3, (1, out_size), jnp.float32) * 0.1
    return {"w0": w0, "b0": b0, "w1": w1, "b1": b1}


if __name__ == "__main__":
    key = jax.random.PRNGKey(0)
    k_graph, k_feat, k_param = jax.random.split(key, 3)

    N = 64            # arbitrary N is fine now (padded to 128 internally)
    IN_SIZE = 32
    HID_SIZE = 32
    OUT_SIZE = 16

    # Deterministic random directed graph (no self-loops) as dense adjacency.
    adj = (jax.random.uniform(k_graph, (N, N)) < 0.1).astype(jnp.float32)
    adj = adj * (1.0 - jnp.eye(N, dtype=jnp.float32))

    x = jax.random.normal(k_feat, (N, IN_SIZE), jnp.float32)
    params = init_params(k_param, IN_SIZE, HID_SIZE, OUT_SIZE)

    # One-time prep (graph, features, params) — hoisted out of the forward path.
    adj_self_p, inv_deg_p, n_pad = prepare_graph(adj)
    x_p = prepare_features(x, n_pad)
    params_p = prepare_params(params)

    fwd = jax.jit(sage_forward)
    out_padded = fwd(adj_self_p, inv_deg_p, x_p, params_p)
    out_padded = jax.block_until_ready(out_padded)
    out = out_padded[:N, :OUT_SIZE]

    # Plain-f32 reference with identical semantics. The kernel uses bf16 MXU
    # operands with f32 accumulation, so compare with a bf16-appropriate tolerance.
    def ref_layer(a, h, w, b, relu):
        deg = jnp.sum(a, axis=-1, keepdims=True)
        agg = (a @ h + h) / (deg + 1.0)
        o = agg @ w + b
        return jnp.maximum(o, 0.0) if relu else o

    ref = ref_layer(adj, x, params["w0"], params["b0"], True)
    ref = ref_layer(adj, ref, params["w1"], params["b1"], False)

    assert out.shape == (N, OUT_SIZE)
    assert jnp.allclose(out, ref, atol=5e-2, rtol=5e-2), (
        f"max abs diff = {float(jnp.max(jnp.abs(out - ref)))}"
    )

    print("KERNEL_OK")
</pallas_src>

<mosaic_0001>
module attributes {stable_mosaic.version = 11 : i64} {
  func.func @_sage_layer_kernel(%arg0: i32, %arg1: memref<128x128xbf16, #tpu.memory_space<vmem>>, %arg2: memref<128x1xf32, #tpu.memory_space<vmem>>, %arg3: memref<128x128xbf16, #tpu.memory_space<vmem>>, %arg4: memref<128x128xbf16, #tpu.memory_space<vmem>>, %arg5: memref<1x128xf32, #tpu.memory_space<vmem>>, %arg6: memref<128x128xf32, #tpu.memory_space<vmem>>) attributes {dimension_semantics = [#tpu.dimension_semantics<parallel>], iteration_bounds = array<i64: 1>, scalar_prefetch = 0 : i64, scratch_operands = 0 : i64, tpu.core_type = #tpu.core_type<tc>, window_params = [{transform_indices = @transform_0, window_bounds = array<i64: 128, 128>}, {transform_indices = @transform_1, window_bounds = array<i64: 128, 1>}, {pipeline_mode = #tpu.pipeline_mode<synchronous>, transform_indices = @transform_2, window_bounds = array<i64: 128, 128>}, {pipeline_mode = #tpu.pipeline_mode<synchronous>, transform_indices = @transform_3, window_bounds = array<i64: 128, 128>}, {pipeline_mode = #tpu.pipeline_mode<synchronous>, transform_indices = @transform_4, window_bounds = array<i64: 1, 128>}, {transform_indices = @transform_5, window_bounds = array<i64: 128, 128>}]} {
    %c0 = arith.constant 0 : index
    %c0_0 = arith.constant 0 : index
    %0 = vector.load %arg1[%c0, %c0_0] : memref<128x128xbf16, #tpu.memory_space<vmem>>, vector<128x128xbf16>
    %c0_1 = arith.constant 0 : index
    %c0_2 = arith.constant 0 : index
    %1 = vector.load %arg3[%c0_1, %c0_2] : memref<128x128xbf16, #tpu.memory_space<vmem>>, vector<128x128xbf16>
    %cst = arith.constant dense<0.000000e+00> : vector<128x128xf32>
    %2 = tpu.matmul %0, %1, %cst {dimension_numbers = #tpu.dot_dimension_numbers<[1], [0], [0], [1], [0, 0, 1, 1], [], []>} : vector<128x128xbf16>, vector<128x128xbf16>, vector<128x128xf32> -> vector<128x128xf32>
    %c0_3 = arith.constant 0 : index
    %c0_4 = arith.constant 0 : index
    %3 = vector.load %arg2[%c0_3, %c0_4] : memref<128x1xf32, #tpu.memory_space<vmem>>, vector<128x1xf32>
    %4 = vector.broadcast %3 : vector<128x1xf32> to vector<128x128xf32>
    %5 = arith.mulf %2, %4 : vector<128x128xf32>
    %6 = arith.truncf %5 : vector<128x128xf32> to vector<128x128xbf16>
    %c0_5 = arith.constant 0 : index
    %c0_6 = arith.constant 0 : index
    %7 = vector.load %arg4[%c0_5, %c0_6] : memref<128x128xbf16, #tpu.memory_space<vmem>>, vector<128x128xbf16>
    %cst_7 = arith.constant dense<0.000000e+00> : vector<128x128xf32>
    %8 = tpu.matmul %6, %7, %cst_7 {dimension_numbers = #tpu.dot_dimension_numbers<[1], [0], [0], [1], [0, 0, 1, 1], [], []>} : vector<128x128xbf16>, vector<128x128xbf16>, vector<128x128xf32> -> vector<128x128xf32>
    %c0_8 = arith.constant 0 : index
    %c0_9 = arith.constant 0 : index
    %9 = vector.load %arg5[%c0_8, %c0_9] : memref<1x128xf32, #tpu.memory_space<vmem>>, vector<1x128xf32>
    %10 = vector.broadcast %9 : vector<1x128xf32> to vector<128x128xf32>
    %11 = arith.addf %8, %10 : vector<128x128xf32>
    %c0_10 = arith.constant 0 : index
    %c0_11 = arith.constant 0 : index
    %12 = vector.load %arg6[%c0_10, %c0_11] : memref<128x128xf32, #tpu.memory_space<vmem>>, vector<128x128xf32>
    tpu.vector_store %arg6[%c0_10, %c0_11], %11 {strides = array<i32>} : memref<128x128xf32, #tpu.memory_space<vmem>>, vector<128x128xf32>,
    return
  }
  func.func @transform_0(%arg0: i32) -> (i32, i32) {
    %c0_i32 = arith.constant 0 : i32
    %c0_i32_0 = arith.constant 0 : i32
    return %arg0, %c0_i32 : i32, i32
  }
  func.func @transform_1(%arg0: i32) -> (i32, i32) {
    %c0_i32 = arith.constant 0 : i32
    %c0_i32_0 = arith.constant 0 : i32
    return %arg0, %c0_i32 : i32, i32
  }
  func.func @transform_2(%arg0: i32) -> (i32, i32) {
    %c0_i32 = arith.constant 0 : i32
    %c0_i32_0 = arith.constant 0 : i32
    %c0_i32_1 = arith.constant 0 : i32
    return %c0_i32, %c0_i32_0 : i32, i32
  }
  func.func @transform_3(%arg0: i32) -> (i32, i32) {
    %c0_i32 = arith.constant 0 : i32
    %c0_i32_0 = arith.constant 0 : i32
    %c0_i32_1 = arith.constant 0 : i32
    return %c0_i32, %c0_i32_0 : i32, i32
  }
  func.func @transform_4(%arg0: i32) -> (i32, i32) {
    %c0_i32 = arith.constant 0 : i32
    %c0_i32_0 = arith.constant 0 : i32
    %c0_i32_1 = arith.constant 0 : i32
    return %c0_i32, %c0_i32_0 : i32, i32
  }
  func.func @transform_5(%arg0: i32) -> (i32, i32) {
    %c0_i32 = arith.constant 0 : i32
    %c0_i32_0 = arith.constant 0 : i32
    return %arg0, %c0_i32 : i32, i32
  }
}

module attributes {stable_mosaic.version = 11 : i64} {
  func.func @_sage_layer_kernel(%arg0: i32, %arg1: memref<128x128xbf16, #tpu.memory_space<vmem>>, %arg2: memref<128x1xf32, #tpu.memory_space<vmem>>, %arg3: memref<128x128xbf16, #tpu.memory_space<vmem>>, %arg4: memref<128x128xbf16, #tpu.memory_space<vmem>>, %arg5: memref<1x128xf32, #tpu.memory_space<vmem>>, %arg6: memref<128x128xbf16, #tpu.memory_space<vmem>>) attributes {dimension_semantics = [#tpu.dimension_semantics<parallel>], iteration_bounds = array<i64: 1>, scalar_prefetch = 0 : i64, scratch_operands = 0 : i64, tpu.core_type = #tpu.core_type<tc>, window_params = [{transform_indices = @transform_0, window_bounds = array<i64: 128, 128>}, {transform_indices = @transform_1, window_bounds = array<i64: 128, 1>}, {pipeline_mode = #tpu.pipeline_mode<synchronous>, transform_indices = @transform_2, window_bounds = array<i64: 128, 128>}, {pipeline_mode = #tpu.pipeline_mode<synchronous>, transform_indices = @transform_3, window_bounds = array<i64: 128, 128>}, {pipeline_mode = #tpu.pipeline_mode<synchronous>, transform_indices = @transform_4, window_bounds = array<i64: 1, 128>}, {transform_indices = @transform_5, window_bounds = array<i64: 128, 128>}]} {
    %c0 = arith.constant 0 : index
    %c0_0 = arith.constant 0 : index
    %0 = vector.load %arg1[%c0, %c0_0] : memref<128x128xbf16, #tpu.memory_space<vmem>>, vector<128x128xbf16>
    %c0_1 = arith.constant 0 : index
    %c0_2 = arith.constant 0 : index
    %1 = vector.load %arg3[%c0_1, %c0_2] : memref<128x128xbf16, #tpu.memory_space<vmem>>, vector<128x128xbf16>
    %cst = arith.constant dense<0.000000e+00> : vector<128x128xf32>
    %2 = tpu.matmul %0, %1, %cst {dimension_numbers = #tpu.dot_dimension_numbers<[1], [0], [0], [1], [0, 0, 1, 1], [], []>} : vector<128x128xbf16>, vector<128x128xbf16>, vector<128x128xf32> -> vector<128x128xf32>
    %c0_3 = arith.constant 0 : index
    %c0_4 = arith.constant 0 : index
    %3 = vector.load %arg2[%c0_3, %c0_4] : memref<128x1xf32, #tpu.memory_space<vmem>>, vector<128x1xf32>
    %4 = vector.broadcast %3 : vector<128x1xf32> to vector<128x128xf32>
    %5 = arith.mulf %2, %4 : vector<128x128xf32>
    %6 = arith.truncf %5 : vector<128x128xf32> to vector<128x128xbf16>
    %c0_5 = arith.constant 0 : index
    %c0_6 = arith.constant 0 : index
    %7 = vector.load %arg4[%c0_5, %c0_6] : memref<128x128xbf16, #tpu.memory_space<vmem>>, vector<128x128xbf16>
    %cst_7 = arith.constant dense<0.000000e+00> : vector<128x128xf32>
    %8 = tpu.matmul %6, %7, %cst_7 {dimension_numbers = #tpu.dot_dimension_numbers<[1], [0], [0], [1], [0, 0, 1, 1], [], []>} : vector<128x128xbf16>, vector<128x128xbf16>, vector<128x128xf32> -> vector<128x128xf32>
    %c0_8 = arith.constant 0 : index
    %c0_9 = arith.constant 0 : index
    %9 = vector.load %arg5[%c0_8, %c0_9] : memref<1x128xf32, #tpu.memory_space<vmem>>, vector<1x128xf32>
    %10 = vector.broadcast %9 : vector<1x128xf32> to vector<128x128xf32>
    %11 = arith.addf %8, %10 : vector<128x128xf32>
    %cst_10 = arith.constant 0.000000e+00 : f32
    %12 = vector.broadcast %cst_10 : f32 to vector<128x128xf32>
    %13 = arith.maximumf %11, %12 : vector<128x128xf32>
    %14 = arith.truncf %13 : vector<128x128xf32> to vector<128x128xbf16>
    %c0_11 = arith.constant 0 : index
    %c0_12 = arith.constant 0 : index
    %15 = vector.load %arg6[%c0_11, %c0_12] : memref<128x128xbf16, #tpu.memory_space<vmem>>, vector<128x128xbf16>
    tpu.vector_store %arg6[%c0_11, %c0_12], %14 {strides = array<i32>} : memref<128x128xbf16, #tpu.memory_space<vmem>>, vector<128x128xbf16>,
    return
  }
  func.func @transform_0(%arg0: i32) -> (i32, i32) {
    %c0_i32 = arith.constant 0 : i32
    %c0_i32_0 = arith.constant 0 : i32
    return %arg0, %c0_i32 : i32, i32
  }
  func.func @transform_1(%arg0: i32) -> (i32, i32) {
    %c0_i32 = arith.constant 0 : i32
    %c0_i32_0 = arith.constant 0 : i32
    return %arg0, %c0_i32 : i32, i32
  }
  func.func @transform_2(%arg0: i32) -> (i32, i32) {
    %c0_i32 = arith.constant 0 : i32
    %c0_i32_0 = arith.constant 0 : i32
    %c0_i32_1 = arith.constant 0 : i32
    return %c0_i32, %c0_i32_0 : i32, i32
  }
  func.func @transform_3(%arg0: i32) -> (i32, i32) {
    %c0_i32 = arith.constant 0 : i32
    %c0_i32_0 = arith.constant 0 : i32
    %c0_i32_1 = arith.constant 0 : i32
    return %c0_i32, %c0_i32_0 : i32, i32
  }
  func.func @transform_4(%arg0: i32) -> (i32, i32) {
    %c0_i32 = arith.constant 0 : i32
    %c0_i32_0 = arith.constant 0 : i32
    %c0_i32_1 = arith.constant 0 : i32
    return %c0_i32, %c0_i32_0 : i32, i32
  }
  func.func @transform_5(%arg0: i32) -> (i32, i32) {
    %c0_i32 = arith.constant 0 : i32
    %c0_i32_0 = arith.constant 0 : i32
    return %arg0, %c0_i32 : i32, i32
  }
}

</mosaic_0001>

<bundles_post_ra>
// kernel: sage_forward.3
= control target key start
LH: loop header
LB: loop body
LE: loop exit
PB: predicated region body
PF: predicated region fallthrough
CT: control target
= control target key end

     0   :  { %v742_v2 = vmov 0   ;;  %s911_s0 = inlined_call_operand.vmem [shape: bf16[128,128], index: 0, kind: input, shape index: {}]   ;;  %s912_s1 = inlined_call_operand.vmem [shape: f32[128,1], index: 1, kind: input, shape index: {}]   ;;  %s913_s2 = inlined_call_operand.vmem [shape: bf16[128,128], index: 2, kind: input, shape index: {}]   ;;  %s914_s3 = inlined_call_operand.vmem [shape: bf16[128,128], index: 3, kind: input, shape index: {}]   ;;  %s915_s4 = inlined_call_operand.vmem [shape: f32[1,128], index: 4, kind: input, shape index: {}]   ;;  %s916_s5 = inlined_call_operand.hbm [shape: f32[128,128], index: 5, kind: output, shape index: {}]  }
   0x1   :  { %v694_v0 = vld [vmem:[%s913_s2] sm:$0xff]   ;;  %v695_v1 = vld [vmem:[%s913_s2 + $0x8] sm:$0xff]   ;;  %692 = vset.pattern.permute.xlu0 %v742_v2  ;;  %693 = vset.pattern.permute.xlu1 %v742_v2  ;;  %v696_v3 = vld [vmem:[%s913_s2 + $0x10] sm:$0xff]  }
   0x2   :  { %624 = vmatprep.subr.bf16.mxu0 %v694_v0  ;;  %v697_v4 = vld [vmem:[%s913_s2 + $0x18] sm:$0xff]   ;;  %v702_v5 = vld [vmem:[%s911_s0] sm:$0xff]   ;;  %v699_v7 = vld [vmem:[%s913_s2 + $0x28] sm:$0xff]  }
   0x3   :  { %625 = vmatpush3.bf16.msra.mxu0 %v694_v0  ;;  %640 = vmatprep.mubr.bf16.mxu0 %v702_v5  ;;  %v698_v6 = vld [vmem:[%s913_s2 + $0x20] sm:$0xff]   ;;  %v249_v9 = vld [vmem:[%s912_s1 + $0x10] sm:$0xff]  ;;  %v248_v10 = vld [vmem:[%s912_s1 + $0x8] sm:$0xff] }
   0x4   :  { %626 = vmatprep.subr.bf16.mxu0 %v695_v1  ;;  %v247_v8 = vld [vmem:[%s912_s1] sm:$0xff]  ;;  %275 = vperm.xlu1 %693, %v249_v9   ;;  %v250_v11 = vld [vmem:[%s912_s1 + $0x18] sm:$0xff]  ;;  %v700_v12 = vld [vmem:[%s913_s2 + $0x30] sm:$0xff]  }
   0x5   :  { %265 = vperm.xlu0 %692, %v247_v8   ;;  %v251_v13 = vld [vmem:[%s912_s1 + $0x20] sm:$0xff]  ;;  %v252_v14 = vld [vmem:[%s912_s1 + $0x28] sm:$0xff]  ;;  %v701_v15 = vld [vmem:[%s913_s2 + $0x38] sm:$0xff]  }
   0x6   :  { %v710_v16 = vld [vmem:[%s914_s3] sm:$0xff]   ;;  %v253_v17 = vld [vmem:[%s912_s1 + $0x30] sm:$0xff]  ;;  %v254_v18 = vld [vmem:[%s912_s1 + $0x38] sm:$0xff] }
   0x7   :  { %627 = vmatpush3.bf16.msra.mxu0 %v695_v1  ;;  %656 = vmatprep.subr.bf16.mxu1 %v710_v16  ;;  %v711_v19 = vld [vmem:[%s914_s3 + $0x8] sm:$0xff]  }
   0x8   :  { %628 = vmatprep.subr.bf16.mxu0 %v696_v3  ;;  %280 = vperm.xlu1 %693, %v250_v11  }
   0x9   :  { %270 = vperm.xlu0 %692, %v248_v10   ;;  %657 = vmatpush3.bf16.msra.mxu1 %v710_v16 }
   0xa   :  { %658 = vmatprep.subr.bf16.mxu1 %v711_v19 }
   0xb   :  { %629 = vmatpush3.bf16.msra.mxu0 %v696_v3 }
   0xc   :  { %630 = vmatprep.subr.bf16.mxu0 %v697_v4  ;;  %290 = vperm.xlu1 %693, %v252_v14  }
   0xd   :  { %285 = vperm.xlu0 %692, %v251_v13  }
   0xf   :  { %631 = vmatpush3.bf16.msra.mxu0 %v697_v4 }
  0x10   :  { %632 = vmatprep.subr.bf16.mxu0 %v698_v6 }
  0x13   :  { %633 = vmatpush3.bf16.msra.mxu0 %v698_v6 }
  0x14   :  { %634 = vmatprep.subr.bf16.mxu0 %v699_v7 }
  0x17   :  { %635 = vmatpush3.bf16.msra.mxu0 %v699_v7 }
  0x18   :  { %636 = vmatprep.subr.bf16.mxu0 %v700_v12 }
  0x1b   :  { %637 = vmatpush3.bf16.msra.mxu0 %v700_v12 }
  0x1c   :  { %10 = vsyncpa [#allocation3], 0  ;;  %638 = vmatprep.subr.bf16.mxu0 %v701_v15  ;;  %v712_v20 = vld [vmem:[%s914_s3 + $0x10] sm:$0xff]   ;;  %295 = vperm.xlu0 %692, %v253_v17   ;;  %v703_v21 = vld [vmem:[%s911_s0 + $0x8] sm:$0xff]  }
  0x1d   :  { %300 = vperm.xlu1 %693, %v254_v18   ;;  %v255_v22 = vld [vmem:[%s912_s1 + $0x40] sm:$0xff]  ;;  %v256_v23 = vld [vmem:[%s912_s1 + $0x48] sm:$0xff]  ;;  %659 = vmatpush3.bf16.msra.mxu1 %v711_v19  ;;  %v704_v24 = vld [vmem:[%s911_s0 + $0x10] sm:$0xff]  }
  0x1e   :  { %660 = vmatprep.subr.bf16.mxu1 %v712_v20  ;;  %v713_v25 = vld [vmem:[%s914_s3 + $0x18] sm:$0xff]   ;;  %v257_v26 = vld [vmem:[%s912_s1 + $0x50] sm:$0xff]  ;;  %v714_v28 = vld [vmem:[%s914_s3 + $0x20] sm:$0xff]  }
  0x1f   :  { %639 = vmatpush3.bf16.msra.mxu0 %v701_v15  ;;  %v258_v27 = vld [vmem:[%s912_s1 + $0x58] sm:$0xff]  ;;  %v259_v30 = vld [vmem:[%s912_s1 + $0x60] sm:$0xff]  ;;  %v260_v31 = vld [vmem:[%s912_s1 + $0x68] sm:$0xff] }
  0x20   :  { %305 = vperm.xlu0 %692, %v255_v22   ;;  %v705_v29 = vld [vmem:[%s911_s0 + $0x18] sm:$0xff]   ;;  %v706_v32 = vld [vmem:[%s911_s0 + $0x20] sm:$0xff]   ;;  %v715_v33 = vld [vmem:[%s914_s3 + $0x28] sm:$0xff]  }
  0x21   :  { %310 = vperm.xlu1 %693, %v256_v23   ;;  %661 = vmatpush3.bf16.msra.mxu1 %v712_v20  ;;  %v261_v34 = vld [vmem:[%s912_s1 + $0x70] sm:$0xff]  ;;  %v262_v35 = vld [vmem:[%s912_s1 + $0x78] sm:$0xff]  ;;  %v707_v36 = vld [vmem:[%s911_s0 + $0x28] sm:$0xff]  }
  0x22   :  { %641 = vmatmul.mubr.bf16.vlgmr.msra.gmra.mrb[0].mxu0 %v703_v21  ;;  %662 = vmatprep.subr.bf16.mxu1 %v713_v25  ;;  %v708_v37 = vld [vmem:[%s911_s0 + $0x30] sm:$0xff]   ;;  %v709_v38 = vld [vmem:[%s911_s0 + $0x38] sm:$0xff]  }
  0x23   :  { %644 = vmatprep.mubr.bf16.mxu0 %v704_v24  ;;  %v716_v39 = vld [vmem:[%s914_s3 + $0x30] sm:$0xff]   ;;  %v717_v40 = vld [vmem:[%s914_s3 + $0x38] sm:$0xff]  }
  0x24   :  { %315 = vperm.xlu0 %692, %v257_v26  }
  0x25   :  { %320 = vperm.xlu1 %693, %v258_v27   ;;  %663 = vmatpush3.bf16.msra.mxu1 %v713_v25 }
  0x26   :  { %664 = vmatprep.subr.bf16.mxu1 %v714_v28 }
  0x28   :  { %325 = vperm.xlu0 %692, %v259_v30  }
  0x29   :  { %330 = vperm.xlu1 %693, %v260_v31   ;;  %665 = vmatpush3.bf16.msra.mxu1 %v714_v28 }
  0x2a   :  { %645 = vmatmul.mubr.bf16.gmra.mrb[4].mxu0 %v705_v29  ;;  %666 = vmatprep.subr.bf16.mxu1 %v715_v33 }
  0x2b   :  { %648 = vmatprep.mubr.bf16.mxu0 %v706_v32 }
  0x2c   :  { %335 = vperm.xlu0 %692, %v261_v34  }
  0x2d   :  { %340 = vperm.xlu1 %693, %v262_v35   ;;  %667 = vmatpush3.bf16.msra.mxu1 %v715_v33  ;;  %v583_v33 = vld [vmem:[%s915_s4] ss:$0 sm:$0xff]  ;;  %s743_s4 = smov [#allocation2]  }
  0x2e   :  { %668 = vmatprep.subr.bf16.mxu1 %v716_v39  ;;  %s556_s20 = sshll.u32 %s743_s4, 4  ;;  %s557_s20 = int_to_ptr.vmem [resolvable:$true] %s556_s20 }
  0x2f   :  { %s718_s21 = scalar_lea.vmem %s557_s20, 2048  ;;  %p723_p1 = scmp.lt.s32.totalorder %s557_s20, %s557_s20 }
  0x30   :  { %p719_p0 = scmp.ne.s32.totalorder %s557_s20, %s718_s21  ;;  %p724_p2 = scmp.lt.s32.totalorder %s718_s21, %s718_s21 }
  0x31   :  { %669 = vmatpush3.bf16.msra.mxu1 %v716_v39 }
  0x32   :  { %649 = vmatmul.mubr.bf16.gmra.mrb[8].mxu0 %v707_v36  ;;  %670 = vmatprep.subr.bf16.mxu1 %v717_v40  ;;  %p725_p3 = por %p724_p2, %p723_p1 }
  0x33   :  { %652 = vmatprep.mubr.bf16.mxu0 %v708_v37 }
  0x34   :  { %p726_p4 = pnand %p725_p3, %p719_p0 }
  0x35   :  { %671 = vmatpush3.bf16.msra.mxu1 %v717_v40 }
  0x3a   :  { %653 = vmatmul.mubr.bf16.gmra.mrb[12].mxu0 %v709_v38 }
  0x83   :  { %v276_v42 = vpop.permute.xlu1 %275 }
  0x84   :  { %v266_v41 = vpop.permute.xlu0 %265 }
  0x87   :  { %v281_v44 = vpop.permute.xlu1 %280 }
  0x88   :  { %v271_v43 = vpop.permute.xlu0 %270 }
  0x8b   :  { %v291_v46 = vpop.permute.xlu1 %290 }
  0x8c   :  { %v286_v45 = vpop.permute.xlu0 %285 }
  0x9b   :  { %v296_v48 = vpop.permute.xlu0 %295 }
  0x9c   :  { %v301_v50 = vpop.permute.xlu1 %300 }
  0x9f   :  { %v306_v59 = vpop.permute.xlu0 %305 }
  0xa0   :  { %v311_v60 = vpop.permute.xlu1 %310 }
  0xa3   :  { %v316_v5 = vpop.permute.xlu0 %315 }
  0xa4   :  { %v321_v7 = vpop.permute.xlu1 %320 }
  0xa7   :  { %v326_v12 = vpop.permute.xlu0 %325 }
  0xa8   :  { %v331_v16 = vpop.permute.xlu1 %330 }
  0xab   :  { %v336_v22 = vpop.permute.xlu0 %335 }
  0xac   :  { %v341_v24 = vpop.permute.xlu1 %340 }
  0xf5   :  { %v642_v47 = vpop.f32.mrb[0].mxu0 }
  0xf6   :  { %v184_v49 = vpop.f32.mrb[1].mxu0  ;;  %v345_v52 = vmul.f32 %v642_v47, %v276_v42 }
  0xf7   :  { %v643_v51 = vpop.f32.mrb[2].mxu0  ;;  %v343_v55 = vmul.f32 %v266_v41, %v184_v49 }
  0xf8   :  { %v346_v53 = vmul.f32 %v643_v51, %v281_v44  ;;  %v187_v54 = vpop.f32.mrb[3].mxu0 }
  0xf9   :  { %v344_v56 = vmul.f32 %v271_v43, %v187_v54 }
  0xfa   :  { %v360_v57 = vpack.c.bf16 %v346_v53, %v345_v52 }
  0xfb   :  { %v359_v58 = vpack.c.bf16 %v344_v56, %v343_v55 }
  0xfd   :  { %v646_v61 = vpop.f32.mrb[4].mxu0  ;;  %672 = vmatprep.mubr.bf16.mxu1 %v359_v58 }
  0xfe   :  { %v200_v62 = vpop.f32.mrb[5].mxu0  ;;  %673 = vmatmul.mubr.bf16.vlgmr.msra.gmra.mrb[0].mxu1 %v360_v57  ;;  %v349_v0 = vmul.f32 %v646_v61, %v296_v48 }
  0xff   :  { %v647_v63 = vpop.f32.mrb[6].mxu0  ;;  %v347_v3 = vmul.f32 %v286_v45, %v200_v62 }
 0x100   :  { %v350_v1 = vmul.f32 %v647_v63, %v301_v50  ;;  %v203_v2 = vpop.f32.mrb[7].mxu0 }
 0x101   :  { %v348_v4 = vmul.f32 %v291_v46, %v203_v2 }
 0x102   :  { %v362_v6 = vpack.c.bf16 %v350_v1, %v349_v0 }
 0x103   :  { %v361_v8 = vpack.c.bf16 %v348_v4, %v347_v3 }
 0x105   :  { %v650_v9 = vpop.f32.mrb[8].mxu0  ;;  %676 = vmatprep.mubr.bf16.mxu1 %v361_v8 }
 0x106   :  { %v216_v10 = vpop.f32.mrb[9].mxu0  ;;  %677 = vmatmul.mubr.bf16.gmra.mrb[4].mxu1 %v362_v6  ;;  %v353_v13 = vmul.f32 %v650_v9, %v316_v5 }
 0x107   :  { %v651_v11 = vpop.f32.mrb[10].mxu0  ;;  %v351_v17 = vmul.f32 %v306_v59, %v216_v10 }
 0x108   :  { %v354_v14 = vmul.f32 %v651_v11, %v321_v7  ;;  %v219_v15 = vpop.f32.mrb[11].mxu0 }
 0x109   :  { %v352_v18 = vmul.f32 %v311_v60, %v219_v15 }
 0x10a   :  { %v364_v19 = vpack.c.bf16 %v354_v14, %v353_v13 }
 0x10b   :  { %v363_v20 = vpack.c.bf16 %v352_v18, %v351_v17 }
 0x10d   :  { %v654_v21 = vpop.f32.mrb[12].mxu0  ;;  %680 = vmatprep.mubr.bf16.mxu1 %v363_v20 }
 0x10e   :  { %v232_v23 = vpop.f32.mrb[13].mxu0  ;;  %681 = vmatmul.mubr.bf16.gmra.mrb[8].mxu1 %v364_v19  ;;  %v357_v26 = vmul.f32 %v654_v21, %v336_v22 }
 0x10f   :  { %v655_v25 = vpop.f32.mrb[14].mxu0  ;;  %v355_v29 = vmul.f32 %v326_v12, %v232_v23 }
 0x110   :  { %v358_v27 = vmul.f32 %v655_v25, %v341_v24  ;;  %v235_v28 = vpop.f32.mrb[15].mxu0 }
 0x111   :  { %v356_v30 = vmul.f32 %v331_v16, %v235_v28 }
 0x112   :  { %v366_v31 = vpack.c.bf16 %v358_v27, %v357_v26 }
 0x113   :  { %v365_v32 = vpack.c.bf16 %v356_v30, %v355_v29 }
 0x115   :  { %684 = vmatprep.mubr.bf16.mxu1 %v365_v32 }
 0x116   :  { %685 = vmatmul.mubr.bf16.gmra.mrb[12].mxu1 %v366_v31 }
 0x1d1   :  { %v674_v34 = vpop.f32.mrb[0].mxu1 }
 0x1d2   :  { %v481_v35 = vadd.f32 %v674_v34, %v583_v33  ;;  %v472_v36 = vpop.f32.mrb[1].mxu1 }
 0x1d3   :  { %v473_v37 = vadd.f32 %v583_v33, %v472_v36  ;;  %v675_v38 = vpop.f32.mrb[2].mxu1 }
 0x1d4   :  { %537 = vst [vmem:[#allocation2 + $0x10] sm:$0xff] %v481_v35  ;;  %v484_v39 = vadd.f32 %v675_v38, %v583_v33  ;;  %v475_v40 = vpop.f32.mrb[3].mxu1 }
 0x1d5   :  { %535 = vst [vmem:[#allocation2] sm:$0xff] %v473_v37  ;;  %v476_v41 = vadd.f32 %v583_v33, %v475_v40 }
 0x1d6   :  { %538 = vst [vmem:[#allocation2 + $0x18] sm:$0xff] %v484_v39 }
 0x1d7   :  { %536 = vst [vmem:[#allocation2 + $0x8] sm:$0xff] %v476_v41 }
 0x1d9   :  { %v678_v42 = vpop.f32.mrb[4].mxu1 }
 0x1da   :  { %v497_v43 = vadd.f32 %v678_v42, %v583_v33  ;;  %v488_v44 = vpop.f32.mrb[5].mxu1 }
 0x1db   :  { %v489_v45 = vadd.f32 %v583_v33, %v488_v44  ;;  %v679_v46 = vpop.f32.mrb[6].mxu1 }
 0x1dc   :  { %541 = vst [vmem:[#allocation2 + $0x30] sm:$0xff] %v497_v43  ;;  %v500_v47 = vadd.f32 %v679_v46, %v583_v33  ;;  %v491_v48 = vpop.f32.mrb[7].mxu1 }
 0x1dd   :  { %539 = vst [vmem:[#allocation2 + $0x20] sm:$0xff] %v489_v45  ;;  %v492_v49 = vadd.f32 %v583_v33, %v491_v48 }
 0x1de   :  { %542 = vst [vmem:[#allocation2 + $0x38] sm:$0xff] %v500_v47 }
 0x1df   :  { %540 = vst [vmem:[#allocation2 + $0x28] sm:$0xff] %v492_v49 }
 0x1e1   :  { %v682_v50 = vpop.f32.mrb[8].mxu1 }
 0x1e2   :  { %v513_v51 = vadd.f32 %v682_v50, %v583_v33  ;;  %v504_v52 = vpop.f32.mrb[9].mxu1 }
 0x1e3   :  { %v505_v53 = vadd.f32 %v583_v33, %v504_v52  ;;  %v683_v54 = vpop.f32.mrb[10].mxu1 }
 0x1e4   :  { %545 = vst [vmem:[#allocation2 + $0x50] sm:$0xff] %v513_v51  ;;  %v516_v55 = vadd.f32 %v683_v54, %v583_v33  ;;  %v507_v56 = vpop.f32.mrb[11].mxu1 }
 0x1e5   :  { %543 = vst [vmem:[#allocation2 + $0x40] sm:$0xff] %v505_v53  ;;  %v508_v57 = vadd.f32 %v583_v33, %v507_v56 }
 0x1e6   :  { %546 = vst [vmem:[#allocation2 + $0x58] sm:$0xff] %v516_v55 }
 0x1e7   :  { %544 = vst [vmem:[#allocation2 + $0x48] sm:$0xff] %v508_v57 }
 0x1e9   :  { %v686_v58 = vpop.f32.mrb[12].mxu1 }
 0x1ea   :  { %v529_v59 = vadd.f32 %v686_v58, %v583_v33  ;;  %v520_v60 = vpop.f32.mrb[13].mxu1 }
 0x1eb   :  { %v521_v61 = vadd.f32 %v583_v33, %v520_v60  ;;  %v687_v62 = vpop.f32.mrb[14].mxu1 }
 0x1ec   :  { %549 = vst [vmem:[#allocation2 + $0x70] sm:$0xff] %v529_v59  ;;  %v532_v63 = vadd.f32 %v687_v62, %v583_v33  ;;  %v523_v0 = vpop.f32.mrb[15].mxu1 }
 0x1ed   :  { %547 = vst [vmem:[#allocation2 + $0x60] sm:$0xff] %v521_v61  ;;  %v524_v1 = vadd.f32 %v583_v33, %v523_v0 }
 0x1ee   :  { %550 = vst [vmem:[#allocation2 + $0x78] sm:$0xff] %v532_v63 }
 0x1ef   :  { %548 = vst [vmem:[#allocation2 + $0x68] sm:$0xff] %v524_v1 }
 0x1f0   :  { %729 = shalt.err (!%p726_p4)
}
 0x1f1   :  { %s730_s24 = scalar_lea.hbm %s916_s5, 2048 }
 0x1f2   :  { %p731_p5 = scmp.ne.s32.totalorder %s916_s5, %s730_s24  ;;  %p734_p6 = scmp.lt.u32.totalorder %s730_s24, %s916_s5 }
 0x1f4   :  { %p736_p7 = pnand %p734_p6, %p731_p5 }
 0x1f6   :  { %739 = shalt.err (!%p736_p7)
}
 0x1f7   :  { %s744_s29 = smov 128   ;;  %s745_s30 = smov 8  }
 0x1f8   :  { %562 = dma.vmem_to_hbm [thread:$0]  %s557_s20, 2048, %s916_s5, [#allocation3], %s744_s29, %s744_s29, %s745_s30  }
 0x1f9   :  { %740 = dma.done.wait [#allocation3], 2048  }
 0x1fa   :  { %741 = vsyncadd [#allocation3], 4294965248 }
 0x1fb   :  { %566 = vsyncpa [#allocation3], 1 }

// kernel: sage_forward.2
= control target key start
LH: loop header
LB: loop body
LE: loop exit
PB: predicated region body
PF: predicated region fallthrough
CT: control target
= control target key end

     0   :  { %10 = vsyncpa [#allocation3], 0  ;;  %s903_s18 = smov [#allocation2]   ;;  %s1072_s0 = inlined_call_operand.vmem [shape: bf16[128,128], index: 0, kind: input, shape index: {}]   ;;  %s1073_s1 = inlined_call_operand.vmem [shape: f32[128,1], index: 1, kind: input, shape index: {}]   ;;  %s1074_s2 = inlined_call_operand.vmem [shape: bf16[128,128], index: 2, kind: input, shape index: {}]   ;;  %s1075_s3 = inlined_call_operand.hbm [shape: bf16[128,128], index: 3, kind: input, shape index: {}]   ;;  %s1076_s4 = inlined_call_operand.vmem [shape: f32[1,128], index: 4, kind: input, shape index: {}]   ;;  %s1077_s5 = inlined_call_operand.vmem [shape: bf16[128,128], index: 5, kind: output, shape index: {}]  }
   0x1   :  { %s22_s19 = sshll.u32 %s903_s18, 4  ;;  %s879_s22 = scalar_lea.hbm %s1075_s3, 1024  ;;  %s23_s19 = int_to_ptr.vmem [resolvable:$true] %s22_s19 }
   0x2   :  { %p880_p0 = scmp.ne.s32.totalorder %s1075_s3, %s879_s22  ;;  %p883_p1 = scmp.lt.u32.totalorder %s879_s22, %s1075_s3 }
   0x4   :  { %p885_p2 = pnand %p883_p1, %p880_p0 }
   0x6   :  { %888 = shalt.err (!%p885_p2)
}
   0x7   :  { %s889_s27 = scalar_lea.vmem %s23_s19, 1024  ;;  %p894_p4 = scmp.lt.s32.totalorder %s23_s19, %s23_s19 }
   0x8   :  { %p890_p3 = scmp.ne.s32.totalorder %s23_s19, %s889_s27  ;;  %p895_p5 = scmp.lt.s32.totalorder %s889_s27, %s889_s27 }
   0xa   :  { %p896_p6 = por %p895_p5, %p894_p4 }
   0xc   :  { %p897_p7 = pnand %p896_p6, %p890_p3 }
   0xe   :  { %900 = shalt.err (!%p897_p7)
}
   0xf   :  { %s904_s28 = smov 64   ;;  %s905_s29 = smov 4  }
  0x10   :  { %28 = dma.hbm_to_vmem [thread:$0]  %s1075_s3, 1024, %s23_s19, [#allocation3], %s904_s28, %s904_s28, %s905_s29  }
  0x11   :  { %901 = dma.done.wait [#allocation3], 1024  }
  0x12   :  { %902 = vsyncadd [#allocation3], 4294966272  ;;  %v906_v0 = vmov 0   ;;  %v855_v1 = vld [vmem:[%s1074_s2] sm:$0xff]   ;;  %v856_v2 = vld [vmem:[%s1074_s2 + $0x8] sm:$0xff]  }
  0x13   :  { %853 = vset.pattern.permute.xlu0 %v906_v0  ;;  %854 = vset.pattern.permute.xlu1 %v906_v0  ;;  %v857_v3 = vld [vmem:[%s1074_s2 + $0x10] sm:$0xff]   ;;  %v858_v4 = vld [vmem:[%s1074_s2 + $0x18] sm:$0xff]   ;;  %v863_v5 = vld [vmem:[%s1072_s0] sm:$0xff]  }
  0x14   :  { %785 = vmatprep.subr.bf16.mxu0 %v855_v1  ;;  %801 = vmatprep.mubr.bf16.mxu0 %v863_v5  ;;  %v859_v6 = vld [vmem:[%s1074_s2 + $0x20] sm:$0xff]   ;;  %v860_v7 = vld [vmem:[%s1074_s2 + $0x28] sm:$0xff]   ;;  %v262_v9 = vld [vmem:[%s1073_s1 + $0x10] sm:$0xff] }
  0x15   :  { %786 = vmatpush3.bf16.msra.mxu0 %v855_v1  ;;  %v260_v8 = vld [vmem:[%s1073_s1] sm:$0xff]  ;;  %288 = vperm.xlu1 %854, %v262_v9   ;;  %v261_v10 = vld [vmem:[%s1073_s1 + $0x8] sm:$0xff]  ;;  %v263_v11 = vld [vmem:[%s1073_s1 + $0x18] sm:$0xff] }
  0x16   :  { %787 = vmatprep.subr.bf16.mxu0 %v856_v2  ;;  %278 = vperm.xlu0 %853, %v260_v8   ;;  %v861_v12 = vld [vmem:[%s1074_s2 + $0x30] sm:$0xff]   ;;  %v264_v13 = vld [vmem:[%s1073_s1 + $0x20] sm:$0xff]  ;;  %v265_v14 = vld [vmem:[%s1073_s1 + $0x28] sm:$0xff] }
  0x17   :  { %v862_v15 = vld [vmem:[%s1074_s2 + $0x38] sm:$0xff]   ;;  %v871_v16 = vld [vmem:[#allocation2] sm:$0xff]   ;;  %v266_v17 = vld [vmem:[%s1073_s1 + $0x30] sm:$0xff] }
  0x18   :  { %v267_v18 = vld [vmem:[%s1073_s1 + $0x38] sm:$0xff]  ;;  %817 = vmatprep.subr.bf16.mxu1 %v871_v16  ;;  %v872_v19 = vld [vmem:[#allocation2 + $0x8] sm:$0xff]   ;;  %v873_v20 = vld [vmem:[#allocation2 + $0x10] sm:$0xff]  }
  0x19   :  { %788 = vmatpush3.bf16.msra.mxu0 %v856_v2  ;;  %293 = vperm.xlu1 %854, %v263_v11   ;;  %v864_v21 = vld [vmem:[%s1072_s0 + $0x8] sm:$0xff]   ;;  %v268_v22 = vld [vmem:[%s1073_s1 + $0x40] sm:$0xff]  ;;  %v865_v24 = vld [vmem:[%s1072_s0 + $0x10] sm:$0xff]  }
  0x1a   :  { %789 = vmatprep.subr.bf16.mxu0 %v857_v3  ;;  %283 = vperm.xlu0 %853, %v261_v10   ;;  %v269_v23 = vld [vmem:[%s1073_s1 + $0x48] sm:$0xff]  ;;  %v874_v25 = vld [vmem:[#allocation2 + $0x18] sm:$0xff]   ;;  %v270_v26 = vld [vmem:[%s1073_s1 + $0x50] sm:$0xff] }
  0x1b   :  { %818 = vmatpush3.bf16.msra.mxu1 %v871_v16  ;;  %v271_v27 = vld [vmem:[%s1073_s1 + $0x58] sm:$0xff]  ;;  %v875_v28 = vld [vmem:[#allocation2 + $0x20] sm:$0xff]   ;;  %v273_v31 = vld [vmem:[%s1073_s1 + $0x68] sm:$0xff] }
  0x1c   :  { %819 = vmatprep.subr.bf16.mxu1 %v872_v19  ;;  %v866_v29 = vld [vmem:[%s1072_s0 + $0x18] sm:$0xff]   ;;  %v272_v30 = vld [vmem:[%s1073_s1 + $0x60] sm:$0xff]  ;;  %v876_v33 = vld [vmem:[#allocation2 + $0x28] sm:$0xff]  }
  0x1d   :  { %790 = vmatpush3.bf16.msra.mxu0 %v857_v3  ;;  %303 = vperm.xlu1 %854, %v265_v14   ;;  %v867_v32 = vld [vmem:[%s1072_s0 + $0x20] sm:$0xff]   ;;  %v274_v34 = vld [vmem:[%s1073_s1 + $0x70] sm:$0xff]  ;;  %v275_v35 = vld [vmem:[%s1073_s1 + $0x78] sm:$0xff] }
  0x1e   :  { %791 = vmatprep.subr.bf16.mxu0 %v858_v4  ;;  %298 = vperm.xlu0 %853, %v264_v13   ;;  %v868_v36 = vld [vmem:[%s1072_s0 + $0x28] sm:$0xff]   ;;  %v869_v37 = vld [vmem:[%s1072_s0 + $0x30] sm:$0xff]   ;;  %v870_v38 = vld [vmem:[%s1072_s0 + $0x38] sm:$0xff]  }
  0x1f   :  { %820 = vmatpush3.bf16.msra.mxu1 %v872_v19  ;;  %v877_v39 = vld [vmem:[#allocation2 + $0x30] sm:$0xff]   ;;  %v878_v40 = vld [vmem:[#allocation2 + $0x38] sm:$0xff]  }
  0x20   :  { %821 = vmatprep.subr.bf16.mxu1 %v873_v20 }
  0x21   :  { %792 = vmatpush3.bf16.msra.mxu0 %v858_v4  ;;  %313 = vperm.xlu1 %854, %v267_v18  }
  0x22   :  { %793 = vmatprep.subr.bf16.mxu0 %v859_v6  ;;  %308 = vperm.xlu0 %853, %v266_v17  }
  0x23   :  { %822 = vmatpush3.bf16.msra.mxu1 %v873_v20 }
  0x24   :  { %823 = vmatprep.subr.bf16.mxu1 %v874_v25 }
  0x25   :  { %794 = vmatpush3.bf16.msra.mxu0 %v859_v6  ;;  %323 = vperm.xlu1 %854, %v269_v23  }
  0x26   :  { %795 = vmatprep.subr.bf16.mxu0 %v860_v7  ;;  %318 = vperm.xlu0 %853, %v268_v22  }
  0x27   :  { %824 = vmatpush3.bf16.msra.mxu1 %v874_v25 }
  0x28   :  { %825 = vmatprep.subr.bf16.mxu1 %v875_v28 }
  0x29   :  { %796 = vmatpush3.bf16.msra.mxu0 %v860_v7  ;;  %333 = vperm.xlu1 %854, %v271_v27  }
  0x2a   :  { %797 = vmatprep.subr.bf16.mxu0 %v861_v12  ;;  %328 = vperm.xlu0 %853, %v270_v26  }
  0x2b   :  { %826 = vmatpush3.bf16.msra.mxu1 %v875_v28 }
  0x2c   :  { %827 = vmatprep.subr.bf16.mxu1 %v876_v33 }
  0x2d   :  { %798 = vmatpush3.bf16.msra.mxu0 %v861_v12  ;;  %343 = vperm.xlu1 %854, %v273_v31  }
  0x2e   :  { %799 = vmatprep.subr.bf16.mxu0 %v862_v15  ;;  %338 = vperm.xlu0 %853, %v272_v30  }
  0x2f   :  { %828 = vmatpush3.bf16.msra.mxu1 %v876_v33  ;;  %v665_v33 = vld [vmem:[%s1076_s4] ss:$0 sm:$0xff] }
  0x30   :  { %829 = vmatprep.subr.bf16.mxu1 %v877_v39 }
  0x31   :  { %800 = vmatpush3.bf16.msra.mxu0 %v862_v15  ;;  %353 = vperm.xlu1 %854, %v275_v35  }
  0x32   :  { %348 = vperm.xlu0 %853, %v274_v34  }
  0x33   :  { %830 = vmatpush3.bf16.msra.mxu1 %v877_v39 }
  0x34   :  { %802 = vmatmul.mubr.bf16.vlgmr.msra.gmra.mrb[0].mxu0 %v864_v21  ;;  %831 = vmatprep.subr.bf16.mxu1 %v878_v40 }
  0x35   :  { %805 = vmatprep.mubr.bf16.mxu0 %v865_v24 }
  0x37   :  { %832 = vmatpush3.bf16.msra.mxu1 %v878_v40 }
  0x3c   :  { %806 = vmatmul.mubr.bf16.gmra.mrb[4].mxu0 %v866_v29 }
  0x3d   :  { %809 = vmatprep.mubr.bf16.mxu0 %v867_v32 }
  0x44   :  { %810 = vmatmul.mubr.bf16.gmra.mrb[8].mxu0 %v868_v36 }
  0x45   :  { %813 = vmatprep.mubr.bf16.mxu0 %v869_v37 }
  0x4c   :  { %814 = vmatmul.mubr.bf16.gmra.mrb[12].mxu0 %v870_v38 }
  0x94   :  { %v289_v42 = vpop.permute.xlu1 %288 }
  0x95   :  { %v279_v41 = vpop.permute.xlu0 %278 }
  0x98   :  { %v294_v44 = vpop.permute.xlu1 %293 }
  0x99   :  { %v284_v43 = vpop.permute.xlu0 %283 }
  0x9c   :  { %v304_v46 = vpop.permute.xlu1 %303 }
  0x9d   :  { %v299_v45 = vpop.permute.xlu0 %298 }
  0xa0   :  { %v314_v50 = vpop.permute.xlu1 %313 }
  0xa1   :  { %v309_v48 = vpop.permute.xlu0 %308 }
  0xa4   :  { %v324_v60 = vpop.permute.xlu1 %323 }
  0xa5   :  { %v319_v59 = vpop.permute.xlu0 %318 }
  0xa8   :  { %v334_v7 = vpop.permute.xlu1 %333 }
  0xa9   :  { %v329_v5 = vpop.permute.xlu0 %328 }
  0xac   :  { %v344_v16 = vpop.permute.xlu1 %343 }
  0xad   :  { %v339_v12 = vpop.permute.xlu0 %338 }
  0xb0   :  { %v354_v24 = vpop.permute.xlu1 %353 }
  0xb1   :  { %v349_v22 = vpop.permute.xlu0 %348 }
 0x107   :  { %v803_v47 = vpop.f32.mrb[0].mxu0 }
 0x108   :  { %v197_v49 = vpop.f32.mrb[1].mxu0  ;;  %v358_v52 = vmul.f32 %v803_v47, %v289_v42 }
 0x109   :  { %v804_v51 = vpop.f32.mrb[2].mxu0  ;;  %v356_v55 = vmul.f32 %v279_v41, %v197_v49 }
 0x10a   :  { %v359_v53 = vmul.f32 %v804_v51, %v294_v44  ;;  %v200_v54 = vpop.f32.mrb[3].mxu0 }
 0x10b   :  { %v357_v56 = vmul.f32 %v284_v43, %v200_v54 }
 0x10c   :  { %v373_v57 = vpack.c.bf16 %v359_v53, %v358_v52 }
 0x10d   :  { %v372_v58 = vpack.c.bf16 %v357_v56, %v356_v55 }
 0x10f   :  { %v807_v61 = vpop.f32.mrb[4].mxu0  ;;  %833 = vmatprep.mubr.bf16.mxu1 %v372_v58 }
 0x110   :  { %v213_v62 = vpop.f32.mrb[5].mxu0  ;;  %834 = vmatmul.mubr.bf16.vlgmr.msra.gmra.mrb[0].mxu1 %v373_v57  ;;  %v362_v0 = vmul.f32 %v807_v61, %v309_v48 }
 0x111   :  { %v808_v63 = vpop.f32.mrb[6].mxu0  ;;  %v360_v3 = vmul.f32 %v299_v45, %v213_v62 }
 0x112   :  { %v363_v1 = vmul.f32 %v808_v63, %v314_v50  ;;  %v216_v2 = vpop.f32.mrb[7].mxu0 }
 0x113   :  { %v361_v4 = vmul.f32 %v304_v46, %v216_v2 }
 0x114   :  { %v375_v6 = vpack.c.bf16 %v363_v1, %v362_v0 }
 0x115   :  { %v374_v8 = vpack.c.bf16 %v361_v4, %v360_v3 }
 0x117   :  { %v811_v9 = vpop.f32.mrb[8].mxu0  ;;  %837 = vmatprep.mubr.bf16.mxu1 %v374_v8 }
 0x118   :  { %v229_v10 = vpop.f32.mrb[9].mxu0  ;;  %838 = vmatmul.mubr.bf16.gmra.mrb[4].mxu1 %v375_v6  ;;  %v366_v13 = vmul.f32 %v811_v9, %v329_v5 }
 0x119   :  { %v812_v11 = vpop.f32.mrb[10].mxu0  ;;  %v364_v17 = vmul.f32 %v319_v59, %v229_v10 }
 0x11a   :  { %v367_v14 = vmul.f32 %v812_v11, %v334_v7  ;;  %v232_v15 = vpop.f32.mrb[11].mxu0 }
 0x11b   :  { %v365_v18 = vmul.f32 %v324_v60, %v232_v15 }
 0x11c   :  { %v377_v19 = vpack.c.bf16 %v367_v14, %v366_v13 }
 0x11d   :  { %v376_v20 = vpack.c.bf16 %v365_v18, %v364_v17 }
 0x11f   :  { %v815_v21 = vpop.f32.mrb[12].mxu0  ;;  %841 = vmatprep.mubr.bf16.mxu1 %v376_v20 }
 0x120   :  { %v245_v23 = vpop.f32.mrb[13].mxu0  ;;  %842 = vmatmul.mubr.bf16.gmra.mrb[8].mxu1 %v377_v19  ;;  %v370_v26 = vmul.f32 %v815_v21, %v349_v22 }
 0x121   :  { %v816_v25 = vpop.f32.mrb[14].mxu0  ;;  %v368_v29 = vmul.f32 %v339_v12, %v245_v23 }
 0x122   :  { %v371_v27 = vmul.f32 %v816_v25, %v354_v24  ;;  %v248_v28 = vpop.f32.mrb[15].mxu0 }
 0x123   :  { %v369_v30 = vmul.f32 %v344_v16, %v248_v28 }
 0x124   :  { %v379_v31 = vpack.c.bf16 %v371_v27, %v370_v26 }
 0x125   :  { %v378_v32 = vpack.c.bf16 %v369_v30, %v368_v29 }
 0x127   :  { %845 = vmatprep.mubr.bf16.mxu1 %v378_v32 }
 0x128   :  { %846 = vmatmul.mubr.bf16.gmra.mrb[12].mxu1 %v379_v31 }
 0x1e3   :  { %v835_v34 = vpop.f32.mrb[0].mxu1 }
 0x1e4   :  { %v494_v35 = vadd.f32 %v835_v34, %v665_v33  ;;  %v485_v36 = vpop.f32.mrb[1].mxu1 }
 0x1e5   :  { %v486_v37 = vadd.f32 %v665_v33, %v485_v36  ;;  %v836_v38 = vpop.f32.mrb[2].mxu1 }
 0x1e6   :  { %v497_v39 = vadd.f32 %v836_v38, %v665_v33  ;;  %v488_v40 = vpop.f32.mrb[3].mxu1  ;;  %v550_v42 = vmax.f32 %v494_v35, 0.0 }
 0x1e7   :  { %v489_v41 = vadd.f32 %v665_v33, %v488_v40  ;;  %v548_v44 = vmax.f32 %v486_v37, 0.0 }
 0x1e8   :  { %v551_v43 = vmax.f32 %v497_v39, 0.0 }
 0x1e9   :  { %v549_v45 = vmax.f32 %v489_v41, 0.0 }
 0x1ea   :  { %v714_v46 = vpack.c.bf16 %v551_v43, %v550_v42 }
 0x1eb   :  { %v709_v47 = vpack.c.bf16 %v549_v45, %v548_v44  ;;  %v839_v48 = vpop.f32.mrb[4].mxu1 }
 0x1ec   :  { %746 = vst [vmem:[%s1077_s5 + $0x8] sm:$0xff] %v714_v46   ;;  %v510_v49 = vadd.f32 %v839_v48, %v665_v33  ;;  %v501_v50 = vpop.f32.mrb[5].mxu1 }
 0x1ed   :  { %710 = vst [vmem:[%s1077_s5] sm:$0xff] %v709_v47   ;;  %v502_v51 = vadd.f32 %v665_v33, %v501_v50  ;;  %v840_v52 = vpop.f32.mrb[6].mxu1 }
 0x1ee   :  { %v513_v53 = vadd.f32 %v840_v52, %v665_v33  ;;  %v504_v54 = vpop.f32.mrb[7].mxu1  ;;  %v554_v56 = vmax.f32 %v510_v49, 0.0 }
 0x1ef   :  { %v505_v55 = vadd.f32 %v665_v33, %v504_v54  ;;  %v552_v58 = vmax.f32 %v502_v51, 0.0 }
 0x1f0   :  { %v555_v57 = vmax.f32 %v513_v53, 0.0 }
 0x1f1   :  { %v553_v59 = vmax.f32 %v505_v55, 0.0 }
 0x1f2   :  { %v724_v60 = vpack.c.bf16 %v555_v57, %v554_v56 }
 0x1f3   :  { %v719_v61 = vpack.c.bf16 %v553_v59, %v552_v58  ;;  %v843_v62 = vpop.f32.mrb[8].mxu1 }
 0x1f4   :  { %748 = vst [vmem:[%s1077_s5 + $0x18] sm:$0xff] %v724_v60   ;;  %v526_v63 = vadd.f32 %v843_v62, %v665_v33  ;;  %v517_v0 = vpop.f32.mrb[9].mxu1 }
 0x1f5   :  { %747 = vst [vmem:[%s1077_s5 + $0x10] sm:$0xff] %v719_v61   ;;  %v518_v1 = vadd.f32 %v665_v33, %v517_v0  ;;  %v844_v2 = vpop.f32.mrb[10].mxu1 }
 0x1f6   :  { %v529_v3 = vadd.f32 %v844_v2, %v665_v33  ;;  %v520_v4 = vpop.f32.mrb[11].mxu1  ;;  %v558_v6 = vmax.f32 %v526_v63, 0.0 }
 0x1f7   :  { %v521_v5 = vadd.f32 %v665_v33, %v520_v4  ;;  %v556_v8 = vmax.f32 %v518_v1, 0.0 }
 0x1f8   :  { %v559_v7 = vmax.f32 %v529_v3, 0.0 }
 0x1f9   :  { %v557_v9 = vmax.f32 %v521_v5, 0.0 }
 0x1fa   :  { %v734_v10 = vpack.c.bf16 %v559_v7, %v558_v6 }
 0x1fb   :  { %v729_v11 = vpack.c.bf16 %v557_v9, %v556_v8  ;;  %v847_v12 = vpop.f32.mrb[12].mxu1 }
 0x1fc   :  { %750 = vst [vmem:[%s1077_s5 + $0x28] sm:$0xff] %v734_v10   ;;  %v542_v13 = vadd.f32 %v847_v12, %v665_v33  ;;  %v533_v14 = vpop.f32.mrb[13].mxu1 }
 0x1fd   :  { %749 = vst [vmem:[%s1077_s5 + $0x20] sm:$0xff] %v729_v11   ;;  %v534_v15 = vadd.f32 %v665_v33, %v533_v14  ;;  %v848_v16 = vpop.f32.mrb[14].mxu1 }
 0x1fe   :  { %v545_v17 = vadd.f32 %v848_v16, %v665_v33  ;;  %v536_v18 = vpop.f32.mrb[15].mxu1  ;;  %v562_v20 = vmax.f32 %v542_v13, 0.0 }
 0x1ff   :  { %v537_v19 = vadd.f32 %v665_v33, %v536_v18  ;;  %v560_v22 = vmax.f32 %v534_v15, 0.0 }
 0x200   :  { %v563_v21 = vmax.f32 %v545_v17, 0.0 }
 0x201   :  { %v561_v23 = vmax.f32 %v537_v19, 0.0 }
 0x202   :  { %v744_v24 = vpack.c.bf16 %v563_v21, %v562_v20 }
 0x203   :  { %v739_v25 = vpack.c.bf16 %v561_v23, %v560_v22 }
 0x204   :  { %752 = vst [vmem:[%s1077_s5 + $0x38] sm:$0xff] %v744_v24  }
 0x205   :  { %751 = vst [vmem:[%s1077_s5 + $0x30] sm:$0xff] %v739_v25  }
 0x206   :  { %648 = vsyncpa [#allocation3], 1 }

</bundles_post_ra>
